<compile_context>
chip_gen: v6e
topology: v6e:2x2x1
jax: 0.10.0
libtpu: 0.0.40
codegen_flags: <defaults>
</compile_context>

<pallas_src>
import jax
import jax.numpy as jnp
from jax.experimental import pallas as pl
from jax.experimental.pallas import tpu as pltpu


def _reorder_gate_cols(a, hidden_size):
    """Reorder last-dim gate blocks from PyTorch i|f|g|o to kernel i|f|o|g."""
    H = hidden_size
    return jnp.concatenate(
        [a[..., :2 * H], a[..., 3 * H:4 * H], a[..., 2 * H:3 * H]], axis=-1)


def make_step_fn(input_size: int, hidden_size: int, num_layers: int):
    """Builds a jitted single-timestep function for an L-layer LSTM (seq = batch = 1)."""
    H = hidden_size
    L = num_layers
    K0 = input_size + H          # fused [x | h] rows for layer 0
    Kr = 2 * H                   # fused [h_below | h] rows for layers 1..L-1
    G4 = 4 * H

    def _stack_body(x_ref, b_ref, hc_prev_ref, hc_out_ref, get_w):
        # hc_prev/hc_out are (2L, H) sublane-major: rows [h_0..h_{L-1} | c_0..c_{L-1}]
        layer_in = x_ref[...]                                   # (1, input_size) f32
        for l in range(L):                                      # static unroll over layers
            h_prev = hc_prev_ref[l:l + 1, :]                    # (1, H)
            c_prev = hc_prev_ref[L + l:L + l + 1, :]            # (1, H)
            xh = jnp.concatenate([layer_in, h_prev], axis=-1)   # (1, K) f32
            # single MXU pass per layer, bf16 operands, f32 accumulation
            gates = jnp.dot(xh.astype(jnp.bfloat16), get_w(l),
                            preferred_element_type=jnp.float32)
            gates = gates + b_ref[l:l + 1, :]                   # (1, 4H) f32
            # gate columns are pre-packed i|f|o|g: one 3H sigmoid + one H tanh
            s = jax.nn.sigmoid(gates[:, :3 * H])
            i = s[:, 0 * H:1 * H]
            f = s[:, 1 * H:2 * H]
            o = s[:, 2 * H:3 * H]
            g = jnp.tanh(gates[:, 3 * H:4 * H])
            c_new = f * c_prev + i * g
            h_new = o * jnp.tanh(c_new)
            # direct per-layer row stores (no epilogue concat)
            hc_out_ref[l:l + 1, :] = h_new
            hc_out_ref[L + l:L + l + 1, :] = c_new
            layer_in = h_new                                    # carried in vregs

    if L > 1:
        def kernel(x_ref, w0_ref, wr_ref, b_ref, hc_prev_ref, hc_out_ref):
            _stack_body(x_ref, b_ref, hc_prev_ref, hc_out_ref,
                        lambda l: w0_ref[...] if l == 0 else wr_ref[l - 1])
        in_specs = [
            pl.BlockSpec((1, input_size), lambda i: (0, 0)),      # x
            pl.BlockSpec((K0, G4), lambda i: (0, 0)),             # layer-0 fused W (bf16)
            pl.BlockSpec((L - 1, Kr, G4), lambda i: (0, 0, 0)),   # layers 1..L-1 fused W (bf16)
            pl.BlockSpec((L, G4), lambda i: (0, 0)),              # bias (f32)
            pl.BlockSpec((2 * L, H), lambda i: (0, 0)),           # packed (h, c) prev
        ]
    else:
        def kernel(x_ref, w0_ref, b_ref, hc_prev_ref, hc_out_ref):
            _stack_body(x_ref, b_ref, hc_prev_ref, hc_out_ref,
                        lambda l: w0_ref[...])
        in_specs = [
            pl.BlockSpec((1, input_size), lambda i: (0, 0)),
            pl.BlockSpec((K0, G4), lambda i: (0, 0)),
            pl.BlockSpec((L, G4), lambda i: (0, 0)),
            pl.BlockSpec((2 * L, H), lambda i: (0, 0)),
        ]

    # Scoped VMEM sized from the actual operands (double-buffered) + headroom,
    # clamped to stay within every chip's default-safe range at these sizes.
    weight_bytes = K0 * G4 * 2 + (L - 1) * Kr * G4 * 2             # bf16
    other_bytes = (input_size + L * G4 + 4 * L * H) * 4            # f32
    vmem_limit = int(min(max(4 * (weight_bytes + other_bytes) + (8 << 20),
                             16 << 20), 32 << 20))

    pallas_step = pl.pallas_call(
        kernel,
        out_shape=jax.ShapeDtypeStruct((2 * L, H), jnp.float32),
        grid_spec=pltpu.PrefetchScalarGridSpec(
            num_scalar_prefetch=0,
            grid=(1,),
            in_specs=in_specs,
            out_specs=pl.BlockSpec((2 * L, H), lambda i: (0, 0)),
        ),
        compiler_params=pltpu.CompilerParams(
            dimension_semantics=("arbitrary",),
            vmem_limit_bytes=vmem_limit),
    )

    def step(x, w0, w_rest, b, hc_prev):
        # x: (input_size,)   hc_prev: (2L, H) packed [h_0..h_{L-1} | c_0..c_{L-1}]
        x2 = x.astype(jnp.float32).reshape(1, input_size)
        if w_rest is None:
            hc = pallas_step(x2, w0, b, hc_prev)
        else:
            hc = pallas_step(x2, w0, w_rest, b, hc_prev)
        h_n = hc[:L].reshape(L, 1, H)
        c_n = hc[L:].reshape(L, 1, H)
        return hc, h_n, c_n

    return jax.jit(step)


def lstm_step_ref(x, wi_list, wh_list, b_list, h_prev, c_prev):
    """Pure-JAX f32 reference for the same single time-step (unfused, i|f|g|o)."""
    H = wh_list[0].shape[0]
    xs = x.reshape(1, -1).astype(jnp.float32)
    hs, cs = [], []
    for l in range(len(wi_list)):
        gates = xs @ wi_list[l] + h_prev[l] @ wh_list[l] + b_list[l]
        i = jax.nn.sigmoid(gates[:, :H])
        f = jax.nn.sigmoid(gates[:, H:2 * H])
        g = jnp.tanh(gates[:, 2 * H:3 * H])
        o = jax.nn.sigmoid(gates[:, 3 * H:])
        c = f * c_prev[l] + i * g
        h = o * jnp.tanh(c)
        hs.append(h)
        cs.append(c)
        xs = h
    return jnp.stack(hs), jnp.stack(cs)


class EmptyStackError(Exception):
    def __init__(self):
        super().__init__('stack is already empty')


class StackLSTMPallas:
    """JAX/Pallas port of StackLSTM: forward == one push of a length-1 sequence."""
    BATCH_SIZE = 1
    SEQ_LEN = 1

    def __init__(self, input_size, hidden_size, num_layers=1, dropout=0.0, key=None):
        if input_size <= 0:
            raise ValueError('nonpositive input size: {}'.format(input_size))
        if hidden_size <= 0:
            raise ValueError('nonpositive hidden size: {}'.format(hidden_size))
        if num_layers <= 0:
            raise ValueError('nonpositive number of layers: {}'.format(num_layers))
        if dropout < 0.0 or dropout >= 1.0:
            raise ValueError('invalid dropout rate: {}'.format(dropout))
        # TODO(synk): inter-layer dropout (training-mode only in PyTorch nn.LSTM) not applied.
        self.input_size = input_size
        self.hidden_size = hidden_size
        self.num_layers = num_layers
        self.dropout = dropout

        H = hidden_size
        L = num_layers
        key = key if key is not None else jax.random.PRNGKey(0)

        # Per-layer f32 weights (kept for the pure-JAX reference, PyTorch i|f|g|o order)
        # plus the fused, column-reordered bf16 stacks used by the kernel.
        # TODO(synk): PyTorch uses orthogonal init; a scaled-normal synthetic init is used here.
        self._wi, self._wh, self._b = [], [], []
        w_rest = []
        self.w0 = None
        for l in range(L):
            key, k1, k2 = jax.random.split(key, 3)
            in_dim = input_size if l == 0 else H
            wi = 0.1 * jax.random.normal(k1, (in_dim, 4 * H), dtype=jnp.float32)
            wh = 0.1 * jax.random.normal(k2, (H, 4 * H), dtype=jnp.float32)
            bl = jnp.zeros((1, 4 * H), dtype=jnp.float32)   # b_ih + b_hh == 0 (StackLSTM init)
            self._wi.append(wi)
            self._wh.append(wh)
            self._b.append(bl)
            w_fused = jnp.concatenate(
                [_reorder_gate_cols(wi, H), _reorder_gate_cols(wh, H)], axis=0)
            if l == 0:
                self.w0 = w_fused.astype(jnp.bfloat16)            # (input_size+H, 4H)
            else:
                w_rest.append(w_fused.astype(jnp.bfloat16))       # (2H, 4H)
        self.w_rest = jnp.stack(w_rest) if L > 1 else None        # (L-1, 2H, 4H) bf16
        self.b = _reorder_gate_cols(jnp.concatenate(self._b, axis=0), H)  # (L, 4H) f32

        self.h0 = jnp.zeros((L, 1, H), dtype=jnp.float32)
        self.c0 = jnp.zeros((L, 1, H), dtype=jnp.float32)
        self._hc0 = jnp.zeros((2 * L, H), dtype=jnp.float32)      # packed init state
        self._states_hist = [(self.h0, self.c0)]
        self._packed_hist = [self._hc0]
        self._outputs_hist = []

        self._step = make_step_fn(input_size, hidden_size, num_layers)

    def __call__(self, inputs):
        if inputs.shape != (self.input_size,):
            raise ValueError('expected input to have size ({},), got {}'.format(
                self.input_size, tuple(inputs.shape)))
        hc, h_n, c_n = self._step(inputs, self.w0, self.w_rest, self.b,
                                  self._packed_hist[-1])
        self._packed_hist.append(hc)
        self._states_hist.append((h_n, c_n))
        # nn.LSTM output for seq_len=1 is the top layer's hidden: (1, 1, H)
        self._outputs_hist.append(h_n[-1].reshape(self.SEQ_LEN, self.BATCH_SIZE, -1))
        return h_n, c_n

    def push(self, *args, **kwargs):
        return self(*args, **kwargs)

    def pop(self):
        if len(self._states_hist) > 1:
            self._outputs_hist.pop()
            self._packed_hist.pop()
            return self._states_hist.pop()
        raise EmptyStackError()

    @property
    def top(self):
        return self._outputs_hist[-1].squeeze() if self._outputs_hist else None

    def __len__(self):
        return len(self._outputs_hist)


if __name__ == "__main__":
    INPUT_SIZE = 32
    HIDDEN_SIZE = 32
    NUM_LAYERS = 2

    key = jax.random.PRNGKey(0)
    key, kx1, kx2, kx3, kparams, kparams1 = jax.random.split(key, 6)

    model = StackLSTMPallas(INPUT_SIZE, HIDDEN_SIZE, num_layers=NUM_LAYERS,
                            dropout=0.0, key=kparams)

    x1 = jax.random.normal(kx1, (INPUT_SIZE,), dtype=jnp.float32)
    x2 = jax.random.normal(kx2, (INPUT_SIZE,), dtype=jnp.float32)

    # push two elements onto the stack (two forward calls)
    h1, c1 = model.push(x1)
    h2, c2 = model.push(x2)
    jax.block_until_ready((h2, c2))

    # correctness vs pure-JAX f32 reference (kernel weights are bf16 -> looser tol)
    rh1, rc1 = lstm_step_ref(x1, model._wi, model._wh, model._b, model.h0, model.c0)
    rh2, rc2 = lstm_step_ref(x2, model._wi, model._wh, model._b, rh1, rc1)
    TOL = dict(atol=2e-2, rtol=2e-2)
    assert jnp.allclose(h1, rh1, **TOL) and jnp.allclose(c1, rc1, **TOL)
    assert jnp.allclose(h2, rh2, **TOL) and jnp.allclose(c2, rc2, **TOL)

    # exercise stack semantics
    assert len(model) == 2
    popped_h, popped_c = model.pop()
    assert jnp.allclose(popped_h, h2) and len(model) == 1
    assert model.top.shape == (HIDDEN_SIZE,)
    # re-pushing after pop resumes from the remaining top state (deterministic)
    h2b, c2b = model.push(x2)
    assert jnp.allclose(h2b, h2, atol=1e-6) and jnp.allclose(c2b, c2, atol=1e-6)

    # single-layer variant with input_size != hidden_size (exercises the no-w_rest path)
    model1 = StackLSTMPallas(16, HIDDEN_SIZE, num_layers=1, dropout=0.0, key=kparams1)
    x3 = jax.random.normal(kx3, (16,), dtype=jnp.float32)
    h3, c3 = model1.push(x3)
    jax.block_until_ready((h3, c3))
    rh3, rc3 = lstm_step_ref(x3, model1._wi, model1._wh, model1._b, model1.h0, model1.c0)
    assert jnp.allclose(h3, rh3, **TOL) and jnp.allclose(c3, rc3, **TOL)

    print("KERNEL_OK")
</pallas_src>

<mosaic_0001>
module attributes {stable_mosaic.version = 11 : i64} {
  func.func @kernel(%arg0: i32, %arg1: memref<1x32xf32, #tpu.memory_space<vmem>>, %arg2: memref<64x128xbf16, #tpu.memory_space<vmem>>, %arg3: memref<1x64x128xbf16, #tpu.memory_space<vmem>>, %arg4: memref<2x128xf32, #tpu.memory_space<vmem>>, %arg5: memref<4x32xf32, #tpu.memory_space<vmem>>, %arg6: memref<4x32xf32, #tpu.memory_space<vmem>>) attributes {dimension_semantics = [#tpu.dimension_semantics<arbitrary>], iteration_bounds = array<i64: 1>, scalar_prefetch = 0 : i64, scratch_operands = 0 : i64, tpu.core_type = #tpu.core_type<tc>, window_params = [{pipeline_mode = #tpu.pipeline_mode<synchronous>, transform_indices = @transform_0, window_bounds = array<i64: 1, 32>}, {pipeline_mode = #tpu.pipeline_mode<synchronous>, transform_indices = @transform_1, window_bounds = array<i64: 64, 128>}, {pipeline_mode = #tpu.pipeline_mode<synchronous>, transform_indices = @transform_2, window_bounds = array<i64: 1, 64, 128>}, {pipeline_mode = #tpu.pipeline_mode<synchronous>, transform_indices = @transform_3, window_bounds = array<i64: 2, 128>}, {pipeline_mode = #tpu.pipeline_mode<synchronous>, transform_indices = @transform_4, window_bounds = array<i64: 4, 32>}, {pipeline_mode = #tpu.pipeline_mode<synchronous>, transform_indices = @transform_5, window_bounds = array<i64: 4, 32>}]} {
    %c0 = arith.constant 0 : index
    %c0_0 = arith.constant 0 : index
    %0 = vector.load %arg1[%c0, %c0_0] : memref<1x32xf32, #tpu.memory_space<vmem>>, vector<1x32xf32>
    %c0_1 = arith.constant 0 : index
    %c0_2 = arith.constant 0 : index
    %1 = vector.load %arg5[%c0_1, %c0_2] : memref<4x32xf32, #tpu.memory_space<vmem>>, vector<1x32xf32>
    %c2 = arith.constant 2 : index
    %c0_3 = arith.constant 0 : index
    %2 = vector.load %arg5[%c2, %c0_3] : memref<4x32xf32, #tpu.memory_space<vmem>>, vector<1x32xf32>
    %3 = tpu.concatenate %0, %1 in 1 : vector<1x32xf32>, vector<1x32xf32> -> vector<1x64xf32>
    %4 = arith.truncf %3 : vector<1x64xf32> to vector<1x64xbf16>
    %c0_4 = arith.constant 0 : index
    %c0_5 = arith.constant 0 : index
    %5 = vector.load %arg2[%c0_4, %c0_5] : memref<64x128xbf16, #tpu.memory_space<vmem>>, vector<64x128xbf16>
    %cst = arith.constant dense<0.000000e+00> : vector<1x128xf32>
    %6 = tpu.matmul %4, %5, %cst {dimension_numbers = #tpu.dot_dimension_numbers<[1], [0], [0], [1], [0, 0, 1, 1], [], []>} : vector<1x64xbf16>, vector<64x128xbf16>, vector<1x128xf32> -> vector<1x128xf32>
    %c0_6 = arith.constant 0 : index
    %c0_7 = arith.constant 0 : index
    %7 = vector.load %arg4[%c0_6, %c0_7] : memref<2x128xf32, #tpu.memory_space<vmem>>, vector<1x128xf32>
    %8 = arith.addf %6, %7 : vector<1x128xf32>
    %9 = vector.extract_strided_slice %8 {offsets = [0, 0], sizes = [1, 96], strides = [1, 1]} : vector<1x128xf32> to vector<1x96xf32>
    %10 = arith.negf %9 : vector<1x96xf32>
    %11 = math.exp %10 : vector<1x96xf32>
    %cst_8 = arith.constant 1.000000e+00 : f32
    %12 = vector.broadcast %cst_8 : f32 to vector<1x96xf32>
    %13 = arith.addf %12, %11 : vector<1x96xf32>
    %14 = arith.divf %12, %13 : vector<1x96xf32>
    %15 = vector.extract_strided_slice %14 {offsets = [0, 0], sizes = [1, 32], strides = [1, 1]} : vector<1x96xf32> to vector<1x32xf32>
    %16 = vector.extract_strided_slice %14 {offsets = [0, 32], sizes = [1, 32], strides = [1, 1]} : vector<1x96xf32> to vector<1x32xf32>
    %17 = vector.extract_strided_slice %14 {offsets = [0, 64], sizes = [1, 32], strides = [1, 1]} : vector<1x96xf32> to vector<1x32xf32>
    %18 = vector.extract_strided_slice %8 {offsets = [0, 96], sizes = [1, 32], strides = [1, 1]} : vector<1x128xf32> to vector<1x32xf32>
    %19 = math.tanh %18 : vector<1x32xf32>
    %20 = arith.mulf %16, %2 : vector<1x32xf32>
    %21 = arith.mulf %15, %19 : vector<1x32xf32>
    %22 = arith.addf %20, %21 : vector<1x32xf32>
    %23 = math.tanh %22 : vector<1x32xf32>
    %24 = arith.mulf %17, %23 : vector<1x32xf32>
    %c0_9 = arith.constant 0 : index
    %c0_10 = arith.constant 0 : index
    %25 = vector.load %arg6[%c0_9, %c0_10] : memref<4x32xf32, #tpu.memory_space<vmem>>, vector<1x32xf32>
    tpu.vector_store %arg6[%c0_9, %c0_10], %24 {strides = array<i32>} : memref<4x32xf32, #tpu.memory_space<vmem>>, vector<1x32xf32>,
    %c2_11 = arith.constant 2 : index
    %c0_12 = arith.constant 0 : index
    %26 = vector.load %arg6[%c2_11, %c0_12] : memref<4x32xf32, #tpu.memory_space<vmem>>, vector<1x32xf32>
    tpu.vector_store %arg6[%c2_11, %c0_12], %22 {strides = array<i32>} : memref<4x32xf32, #tpu.memory_space<vmem>>, vector<1x32xf32>,
    %c1 = arith.constant 1 : index
    %c0_13 = arith.constant 0 : index
    %27 = vector.load %arg5[%c1, %c0_13] : memref<4x32xf32, #tpu.memory_space<vmem>>, vector<1x32xf32>
    %c3 = arith.constant 3 : index
    %c0_14 = arith.constant 0 : index
    %28 = vector.load %arg5[%c3, %c0_14] : memref<4x32xf32, #tpu.memory_space<vmem>>, vector<1x32xf32>
    %29 = tpu.concatenate %24, %27 in 1 : vector<1x32xf32>, vector<1x32xf32> -> vector<1x64xf32>
    %30 = arith.truncf %29 : vector<1x64xf32> to vector<1x64xbf16>
    %c0_15 = arith.constant 0 : index
    %c0_16 = arith.constant 0 : index
    %c0_17 = arith.constant 0 : index
    %31 = vector.load %arg3[%c0_15, %c0_16, %c0_17] : memref<1x64x128xbf16, #tpu.memory_space<vmem>>, vector<1x64x128xbf16>
    %32 = vector.shape_cast %31 : vector<1x64x128xbf16> to vector<64x128xbf16>
    %cst_18 = arith.constant dense<0.000000e+00> : vector<1x128xf32>
    %33 = tpu.matmul %30, %32, %cst_18 {dimension_numbers = #tpu.dot_dimension_numbers<[1], [0], [0], [1], [0, 0, 1, 1], [], []>} : vector<1x64xbf16>, vector<64x128xbf16>, vector<1x128xf32> -> vector<1x128xf32>
    %c1_19 = arith.constant 1 : index
    %c0_20 = arith.constant 0 : index
    %34 = vector.load %arg4[%c1_19, %c0_20] : memref<2x128xf32, #tpu.memory_space<vmem>>, vector<1x128xf32>
    %35 = arith.addf %33, %34 : vector<1x128xf32>
    %36 = vector.extract_strided_slice %35 {offsets = [0, 0], sizes = [1, 96], strides = [1, 1]} : vector<1x128xf32> to vector<1x96xf32>
    %37 = arith.negf %36 : vector<1x96xf32>
    %38 = math.exp %37 : vector<1x96xf32>
    %cst_21 = arith.constant 1.000000e+00 : f32
    %39 = vector.broadcast %cst_21 : f32 to vector<1x96xf32>
    %40 = arith.addf %39, %38 : vector<1x96xf32>
    %41 = arith.divf %39, %40 : vector<1x96xf32>
    %42 = vector.extract_strided_slice %41 {offsets = [0, 0], sizes = [1, 32], strides = [1, 1]} : vector<1x96xf32> to vector<1x32xf32>
    %43 = vector.extract_strided_slice %41 {offsets = [0, 32], sizes = [1, 32], strides = [1, 1]} : vector<1x96xf32> to vector<1x32xf32>
    %44 = vector.extract_strided_slice %41 {offsets = [0, 64], sizes = [1, 32], strides = [1, 1]} : vector<1x96xf32> to vector<1x32xf32>
    %45 = vector.extract_strided_slice %35 {offsets = [0, 96], sizes = [1, 32], strides = [1, 1]} : vector<1x128xf32> to vector<1x32xf32>
    %46 = math.tanh %45 : vector<1x32xf32>
    %47 = arith.mulf %43, %28 : vector<1x32xf32>
    %48 = arith.mulf %42, %46 : vector<1x32xf32>
    %49 = arith.addf %47, %48 : vector<1x32xf32>
    %50 = math.tanh %49 : vector<1x32xf32>
    %51 = arith.mulf %44, %50 : vector<1x32xf32>
    %c1_22 = arith.constant 1 : index
    %c0_23 = arith.constant 0 : index
    %52 = vector.load %arg6[%c1_22, %c0_23] : memref<4x32xf32, #tpu.memory_space<vmem>>, vector<1x32xf32>
    tpu.vector_store %arg6[%c1_22, %c0_23], %51 {strides = array<i32>} : memref<4x32xf32, #tpu.memory_space<vmem>>, vector<1x32xf32>,
    %c3_24 = arith.constant 3 : index
    %c0_25 = arith.constant 0 : index
    %53 = vector.load %arg6[%c3_24, %c0_25] : memref<4x32xf32, #tpu.memory_space<vmem>>, vector<1x32xf32>
    tpu.vector_store %arg6[%c3_24, %c0_25], %49 {strides = array<i32>} : memref<4x32xf32, #tpu.memory_space<vmem>>, vector<1x32xf32>,
    return
  }
  func.func @transform_0(%arg0: i32) -> (i32, i32) {
    %c0_i32 = arith.constant 0 : i32
    %c0_i32_0 = arith.constant 0 : i32
    %c0_i32_1 = arith.constant 0 : i32
    return %c0_i32, %c0_i32_0 : i32, i32
  }
  func.func @transform_1(%arg0: i32) -> (i32, i32) {
    %c0_i32 = arith.constant 0 : i32
    %c0_i32_0 = arith.constant 0 : i32
    %c0_i32_1 = arith.constant 0 : i32
    return %c0_i32, %c0_i32_0 : i32, i32
  }
  func.func @transform_2(%arg0: i32) -> (i32, i32, i32) {
    %c0_i32 = arith.constant 0 : i32
    %c0_i32_0 = arith.constant 0 : i32
    %c0_i32_1 = arith.constant 0 : i32
    %c0_i32_2 = arith.constant 0 : i32
    return %c0_i32, %c0_i32_0, %c0_i32_1 : i32, i32, i32
  }
  func.func @transform_3(%arg0: i32) -> (i32, i32) {
    %c0_i32 = arith.constant 0 : i32
    %c0_i32_0 = arith.constant 0 : i32
    %c0_i32_1 = arith.constant 0 : i32
    return %c0_i32, %c0_i32_0 : i32, i32
  }
  func.func @transform_4(%arg0: i32) -> (i32, i32) {
    %c0_i32 = arith.constant 0 : i32
    %c0_i32_0 = arith.constant 0 : i32
    %c0_i32_1 = arith.constant 0 : i32
    return %c0_i32, %c0_i32_0 : i32, i32
  }
  func.func @transform_5(%arg0: i32) -> (i32, i32) {
    %c0_i32 = arith.constant 0 : i32
    %c0_i32_0 = arith.constant 0 : i32
    %c0_i32_1 = arith.constant 0 : i32
    return %c0_i32, %c0_i32_0 : i32, i32
  }
}

</mosaic_0001>

<bundles_post_ra>
// kernel: step.1
= control target key start
LH: loop header
LB: loop body
LE: loop exit
PB: predicated region body
PF: predicated region fallthrough
CT: control target
= control target key end

     0   :  { %10 = vsyncpa [#allocation3], 0  ;;  %s526_s0 = inlined_call_operand.vmem [shape: f32[1,32], index: 0, kind: input, shape index: {}]   ;;  %s527_s1 = inlined_call_operand.hbm [shape: bf16[64,128], index: 1, kind: input, shape index: {}]   ;;  %s528_s2 = inlined_call_operand.hbm [shape: bf16[1,64,128], index: 2, kind: input, shape index: {}]   ;;  %s529_s3 = inlined_call_operand.vmem [shape: f32[2,128], index: 3, kind: input, shape index: {}]   ;;  %s530_s4 = inlined_call_operand.vmem [shape: f32[4,32], index: 4, kind: input, shape index: {}]   ;;  %s531_s5 = inlined_call_operand.vmem [shape: f32[4,32], index: 5, kind: output, shape index: {}]  }
   0x1   :  { %11 = vsyncpa [#allocation5], 0  ;;  %s425_s18 = smov [#allocation2]  }
   0x2   :  { %s19_s19 = sshll.u32 %s425_s18, 4  ;;  %s20_s19 = int_to_ptr.vmem [resolvable:$true] %s19_s19 }
   0x3   :  { %s389_s20 = scalar_lea.vmem %s20_s19, 512  ;;  %p394_p1 = scmp.lt.s32.totalorder %s20_s19, %s20_s19 }
   0x4   :  { %p390_p0 = scmp.ne.s32.totalorder %s20_s19, %s389_s20  ;;  %p395_p2 = scmp.lt.s32.totalorder %s389_s20, %s389_s20 }
   0x6   :  { %p396_p3 = por %p395_p2, %p394_p1 }
   0x8   :  { %p397_p4 = pnand %p396_p3, %p390_p0 }
   0xa   :  { %400 = shalt.err (!%p397_p4)
}
   0xb   :  { %s426_s21 = smov 64   ;;  %s427_s22 = smov 4  }
   0xc   :  { %25 = dma.hbm_to_vmem [thread:$0]  %s527_s1, 512, %s20_s19, [#allocation3], %s426_s21, %s426_s21, %s427_s22  }
   0xd   :  { %s428_s25 = smov [#allocation4]  }
   0xe   :  { %s31_s26 = sshll.u32 %s428_s25, 4  ;;  %s32_s26 = int_to_ptr.vmem [resolvable:$true] %s31_s26 }
   0xf   :  { %s409_s27 = scalar_lea.vmem %s32_s26, 512  ;;  %p414_p6 = scmp.lt.s32.totalorder %s32_s26, %s32_s26 }
  0x10   :  { %p410_p5 = scmp.ne.s32.totalorder %s32_s26, %s409_s27  ;;  %p415_p7 = scmp.lt.s32.totalorder %s409_s27, %s409_s27 }
  0x12   :  { %p416_p8 = por %p415_p7, %p414_p6 }
  0x14   :  { %p417_p9 = pnand %p416_p8, %p410_p5 }
  0x16   :  { %420 = shalt.err (!%p417_p9)
}
  0x17   :  { %37 = dma.hbm_to_vmem [thread:$0]  %s528_s2, 512, %s32_s26, [#allocation5], %s426_s21, %s426_s21, %s427_s22  }
  0x18   :  { %421 = dma.done.wait [#allocation3], 512  }
  0x19   :  { %422 = vsyncadd [#allocation3], 4294966784 }
  0x1a   :  { %423 = dma.done.wait [#allocation5], 512  }
  0x1b   :  { %424 = vsyncadd [#allocation5], 4294966784  ;;  %v429_v0 = vmov 0.0   ;;  %vm430_vm0 = vmmov 0   ;;  %v50_v1 = vld [vmem:[%s530_s4] sm:$0x1] }
  0x1c   :  { %325 = vmatprep.subr.bf16.mxu0 %v429_v0  ;;  %333 = vmatprep.mubr.msk.bf16.mxu0 %vm430_vm0, %v429_v0  ;;  %s431_s6 = smov 32   ;;  %v357_v2 = vld [vmem:[#allocation2 + $0x18] sm:$0xff]   ;;  %v358_v3 = vld [vmem:[#allocation2 + $0x10] sm:$0xff]   ;;  %v51_v4 = vld [vmem:[%s530_s4 + $0x2] sm:$0x1]  ;;  %vm56_vm1 = vcmask 261120  }
  0x1d   :  { %337 = vmatprep.subr.bf16.mxu1 %v429_v0  ;;  %345 = vmatprep.mubr.msk.bf16.mxu1 %vm430_vm0, %v429_v0  ;;  %v359_v5 = vld [vmem:[#allocation2 + $0x8] sm:$0xff]   ;;  %v360_v6 = vld [vmem:[#allocation2] sm:$0xff]   ;;  %vm92_vm2 = vcmask 523264   ;;  %v361_v28 = vld [vmem:[#allocation4 + $0x18] sm:$0xff]   ;;  %vm168_vm3 = vcmask 253952  }
  0x1e   :  { %53 = vrot.lane.b32.xlu0 %v50_v1, %s431_s6  ;;  %326 = vmatpush3.bf16.msra.mxu0 %v357_v2  ;;  %v49_v7 = vld [vmem:[%s526_s0] sm:$0x1]  ;;  %v362_v29 = vld [vmem:[#allocation4 + $0x10] sm:$0xff]   ;;  %v363_v30 = vld [vmem:[#allocation4 + $0x8] sm:$0xff]  }
  0x1f   :  { %327 = vmatprep.subr.bf16.mxu0 %v429_v0  ;;  %144 = vrot.lane.b32.xlu1 %v51_v4, %s431_s6  ;;  %v67_v11 = vld [vmem:[%s529_s3] sm:$0x1]  ;;  %v175_v32 = vld [vmem:[%s530_s4 + $0x1] sm:$0x1]  ;;  %v176_v34 = vld [vmem:[%s530_s4 + $0x3] sm:$0x1] }
  0x20   :  { %338 = vmatpush3.bf16.msra.mxu1 %v361_v28  ;;  %v364_v33 = vld [vmem:[#allocation4] sm:$0xff]  }
  0x21   :  { %339 = vmatprep.subr.bf16.mxu1 %v429_v0  ;;  %v191_v41 = vld [vmem:[%s529_s3 + $0x1] sm:$0x1]  ;;  %s432_s3 = smov 96  }
  0x22   :  { %328 = vmatpush3.bf16.msra.mxu0 %v358_v3 }
  0x23   :  { %329 = vmatprep.subr.bf16.mxu0 %v429_v0 }
  0x24   :  { %340 = vmatpush3.bf16.msra.mxu1 %v362_v29 }
  0x25   :  { %341 = vmatprep.subr.bf16.mxu1 %v429_v0 }
  0x26   :  { %330 = vmatpush3.bf16.msra.mxu0 %v359_v5 }
  0x27   :  { %331 = vmatprep.subr.bf16.mxu0 %v429_v0 }
  0x28   :  { %342 = vmatpush3.bf16.msra.mxu1 %v363_v30 }
  0x29   :  { %343 = vmatprep.subr.bf16.mxu1 %v429_v0 }
  0x2a   :  { %332 = vmatpush3.bf16.msra.mxu0 %v360_v6 }
  0x2c   :  { %344 = vmatpush3.bf16.msra.mxu1 %v364_v33 }
  0x90   :  { %v54_v8 = vpop.permute.xlu0 %53 }
  0x91   :  { %v57_v9 = vsel %vm56_vm1, %v49_v7, %v54_v8  ;;  %v145_v24 = vpop.permute.xlu1 %144 }
  0x92   :  { %v58_v10 = vpack.c.bf16 %v57_v9, %v57_v9 }
  0x94   :  { %334 = vmatmul.mubr.msk.bf16.vlgmr.msra.gmra.mxu0 %vm92_vm2, %v58_v10 }
 0x154   :  { %v130_v12 = vpop.f32.mrf.mxu0 }
 0x155   :  { %v131_v13 = vadd.f32 %v130_v12, %v67_v11 }
 0x156   :  { %v335_v14 = vpop.f32.mrf.mxu0 }
 0x157   :  { %365 = vtanh.f32 %v131_v13  ;;  %v308_v18 = vmul.f32 -1.442695, %v131_v13 }
 0x158   :  { %v133_v15 = vpop.f32.mrf.mxu0 }
 0x159   :  { %367 = vpow2.f32 %v308_v18 }
 0x15a   :  { %v336_v16 = vpop.f32.mrf.mxu0 }
 0x164   :  { %v366_v17 = vpop.eup %365 }
 0x165   :  { %149 = vrot.lane.b32.xlu0 %v366_v17, %s431_s6 }
 0x166   :  { %v368_v19 = vpop.eup %367 }
 0x167   :  { %v139_v20 = vadd.f32 1.0, %v368_v19 }
 0x169   :  { %369 = vrcp.f32 %v139_v20 }
 0x176   :  { %v370_v21 = vpop.eup %369 }
 0x177   :  { %v147_v25 = vmul.f32 %v370_v21, %v145_v24 }
 0x1d7   :  { %v150_v22 = vpop.permute.xlu0 %149 }
 0x1d8   :  { %v152_v23 = vmul.f32 %v370_v21, %v150_v22 }
 0x1da   :  { %154 = vrot.lane.b32.xlu1 %v152_v23, %s431_s6 }
 0x24c   :  { %v155_v26 = vpop.permute.xlu1 %154 }
 0x24d   :  { %v157_v27 = vadd.f32 %v155_v26, %v147_v25 }
 0x24f   :  { %371 = vtanh.f32 %v157_v27 }
 0x25c   :  { %v372_v31 = vpop.eup %371 }
 0x25d   :  { %160 = vrot.lane.b32.xlu0 %v372_v31, %s431_s6 }
 0x261   :  { %178 = vrot.lane.b32.xlu0 %v175_v32, %s431_s6 }
 0x265   :  { %267 = vrot.lane.b32.xlu0 %v176_v34, %s431_s6 }
 0x2cf   :  { %v161_v35 = vpop.permute.xlu0 %160 }
 0x2d0   :  { %v163_v36 = vmul.f32 %v370_v21, %v161_v35 }
 0x2d2   :  { %165 = vrot.lane.b32.xlu1 %v163_v36, %s426_s21 }
 0x2d3   :  { %v179_v37 = vpop.permute.xlu0 %178 }
 0x2d7   :  { %v268_v54 = vpop.permute.xlu0 %267 }
 0x344   :  { %v166_v38 = vpop.permute.xlu1 %165 }
 0x345   :  { %169 = vst.msk [vmem:[%s531_s5] sm:$0x1] %vm168_vm3, %v166_v38  ;;  %v181_v39 = vsel %vm56_vm1, %v166_v38, %v179_v37 }
 0x346   :  { %v182_v40 = vpack.c.bf16 %v181_v39, %v181_v39 }
 0x348   :  { %346 = vmatmul.mubr.msk.bf16.vlgmr.msra.gmra.mxu1 %vm92_vm2, %v182_v40 }
 0x408   :  { %v253_v42 = vpop.f32.mrf.mxu1 }
 0x409   :  { %v254_v43 = vadd.f32 %v253_v42, %v191_v41 }
 0x40a   :  { %v347_v44 = vpop.f32.mrf.mxu1 }
 0x40b   :  { %373 = vtanh.f32 %v254_v43  ;;  %v314_v48 = vmul.f32 -1.442695, %v254_v43 }
 0x40c   :  { %v256_v45 = vpop.f32.mrf.mxu1 }
 0x40d   :  { %375 = vpow2.f32 %v314_v48 }
 0x40e   :  { %v348_v46 = vpop.f32.mrf.mxu1 }
 0x418   :  { %v374_v47 = vpop.eup %373 }
 0x419   :  { %272 = vrot.lane.b32.xlu1 %v374_v47, %s431_s6 }
 0x41a   :  { %v376_v49 = vpop.eup %375 }
 0x41b   :  { %v262_v50 = vadd.f32 1.0, %v376_v49 }
 0x41d   :  { %377 = vrcp.f32 %v262_v50 }
 0x42a   :  { %v378_v51 = vpop.eup %377 }
 0x42b   :  { %v270_v55 = vmul.f32 %v378_v51, %v268_v54 }
 0x48b   :  { %v273_v52 = vpop.permute.xlu1 %272 }
 0x48c   :  { %v275_v53 = vmul.f32 %v378_v51, %v273_v52 }
 0x48e   :  { %277 = vrot.lane.b32.xlu1 %v275_v53, %s431_s6 }
 0x492   :  { %171 = vrot.lane.b32.xlu1 %v157_v27, %s432_s3 }
 0x500   :  { %v278_v56 = vpop.permute.xlu1 %277 }
 0x501   :  { %v280_v57 = vadd.f32 %v278_v56, %v270_v55 }
 0x503   :  { %379 = vtanh.f32 %v280_v57  ;;  %293 = vrot.lane.b32.xlu1 %v280_v57, %s432_s3 }
 0x504   :  { %v172_v58 = vpop.permute.xlu1 %171 }
 0x505   :  { %174 = vst.msk [vmem:[%s531_s5 + $0x2] sm:$0x1] %vm168_vm3, %v172_v58 }
 0x510   :  { %v380_v59 = vpop.eup %379 }
 0x511   :  { %283 = vrot.lane.b32.xlu0 %v380_v59, %s431_s6 }
 0x575   :  { %v294_v60 = vpop.permute.xlu1 %293 }
 0x576   :  { %296 = vst.msk [vmem:[%s531_s5 + $0x3] sm:$0x1] %vm168_vm3, %v294_v60 }
 0x583   :  { %v284_v61 = vpop.permute.xlu0 %283 }
 0x584   :  { %v286_v62 = vmul.f32 %v378_v51, %v284_v61 }
 0x586   :  { %288 = vrot.lane.b32.xlu0 %v286_v62, %s426_s21 }
 0x5f8   :  { %v289_v63 = vpop.permute.xlu0 %288 }
 0x5f9   :  { %291 = vst.msk [vmem:[%s531_s5 + $0x1] sm:$0x1] %vm168_vm3, %v289_v63 }
 0x5fa   :  { %301 = vsyncpa [#allocation3], 1 }
 0x5fb   :  { %302 = vsyncpa [#allocation5], 1 }

</bundles_post_ra>
